<compile_context>
chip_gen: v5e
topology: v5e:2x2
jax: 0.10.0
libtpu: 0.0.40
codegen_flags: <defaults>
</compile_context>

<pallas_src>
import functools

import jax
import jax.numpy as jnp
from jax.experimental import pallas as pl
from jax.experimental.pallas import tpu as pltpu

NUM_LABELS = 17          # len(label2id)
LABEL_PAD = 128          # lane-dense padded label dimension
DROPOUT_P = 0.2
_NEG_INF = -1e30


def _round_up(x, m):
    return (x + m - 1) // m * m


def _mix32(h):
    """murmur3-style 32-bit finalizer in wrapping int32 arithmetic.

    Logical right shifts are emulated with (arithmetic shift & mask) so the
    whole hash stays in int32 (lowers on Mosaic and in interpret mode).
    """
    h = h ^ ((h >> 16) & jnp.int32(0xFFFF))
    h = h * jnp.int32(-2048144789)        # 0x85EBCA6B
    h = h ^ ((h >> 13) & jnp.int32(0x7FFFF))
    h = h * jnp.int32(-1028477387)        # 0xC2B2AE35
    h = h ^ ((h >> 16) & jnp.int32(0xFFFF))
    return h


def _ner_head_kernel(x_ref, w_ref, b_ref, label_ref, mask_ref, seed_ref,
                     logits_ref, part_ref, *, dropout_p):
    """Fused dropout + label_linear + masked-CE partials for one row tile.

    x_ref:      (TN, H)       bf16  -- activation row tile
    w_ref:      (H, 128)      bf16  -- label_linear weight, label-dim padded
    b_ref:      (1, 128)      f32   -- bias (padded lanes = -1e30)
    label_ref:  (TN, 1)       i32   -- token_label
    mask_ref:   (TN, 1)       f32   -- attention_mask (1.0 valid / 0.0 pad)
    seed_ref:   (1,)          i32   -- dropout seed (SMEM)
    logits_ref: (TN, 128)     f32   -- output logits tile
    part_ref:   (8, 128)      f32   -- [0,0]=sum(nll*mask), [0,1]=sum(mask)
    """
    tn, hdim = x_ref.shape
    x = x_ref[...]                                           # (TN, H) bf16

    if dropout_p > 0.0:
        # Counter-based hash PRNG; per-element counters use the *global* row
        # index so different tiles get uncorrelated dropout masks.
        row = jax.lax.broadcasted_iota(jnp.int32, (tn, hdim), 0)
        col = jax.lax.broadcasted_iota(jnp.int32, (tn, hdim), 1)
        gidx = (pl.program_id(0) * tn + row) * hdim + col
        h = _mix32(gidx + seed_ref[0] * jnp.int32(-1640531527))  # 0x9E3779B9
        thresh = jnp.int32(int(round((1.0 - dropout_p) * (1 << 23))))
        keep = (h & jnp.int32(0x7FFFFF)) < thresh
        x = jnp.where(keep, x, jnp.zeros_like(x))
        scale = jnp.float32(1.0 / (1.0 - dropout_p))
    else:
        scale = jnp.float32(1.0)

    # label_linear on the MXU (bf16 operands, f32 accumulate).  The 1/(1-p)
    # dropout scale is folded into the much smaller logits tensor.
    acc = jnp.dot(x, w_ref[...], preferred_element_type=jnp.float32)
    logits = acc * scale + b_ref[...]                        # (TN, 128) f32
    logits_ref[...] = logits

    # Masked cross-entropy partials.  Padded label lanes have bias -1e30 so
    # exp(padded - m) == 0 and the log-sum-exp is unaffected; real labels
    # (< 17) never index a padded lane.
    m = jnp.max(logits, axis=-1, keepdims=True)
    lse = jnp.log(jnp.sum(jnp.exp(logits - m), axis=-1, keepdims=True)) + m
    lab = label_ref[...]                                     # (TN, 1)
    onehot = jax.lax.broadcasted_iota(jnp.int32, logits.shape, 1) == lab
    picked = jnp.sum(jnp.where(onehot, logits, 0.0), axis=-1, keepdims=True)
    nll = lse - picked                                       # (TN, 1)
    msk = mask_ref[...]                                      # (TN, 1)
    tile_sum = jnp.sum(nll * msk)
    tile_cnt = jnp.sum(msk)

    ridx = jax.lax.broadcasted_iota(jnp.int32, part_ref.shape, 0)
    cidx = jax.lax.broadcasted_iota(jnp.int32, part_ref.shape, 1)
    part_ref[...] = (jnp.where((ridx == 0) & (cidx == 0), tile_sum, 0.0)
                     + jnp.where((ridx == 0) & (cidx == 1), tile_cnt, 0.0))


def ner_head(last_hidden_state, attention_mask, token_label, weight, bias,
             dropout_seed, *, train=True, row_tile=1024):
    """Flattens (B,S,H), runs the gridded Pallas kernel, assembles outputs.

    row_tile=1024 keeps (x tile + padded logits tile) x 2 buffers well under
    v7x's 32 MiB default scoped VMEM even at H=768; v5e/v6e have headroom.
    """
    B, S, H = last_hidden_state.shape
    L = weight.shape[1]
    N = B * S

    tn = min(row_tile, _round_up(N, 16))     # 16-row multiple for bf16 packing
    n_pad = _round_up(N, tn)
    num_tiles = n_pad // tn

    # bf16 activations/weights halve the dominant HBM transfer (kernel is
    # bandwidth-bound on x); loss math stays in f32.
    x2d = last_hidden_state.reshape(N, H).astype(jnp.bfloat16)
    x2d = jnp.pad(x2d, ((0, n_pad - N), (0, 0)))
    labels2d = jnp.pad(token_label.reshape(N, 1).astype(jnp.int32),
                       ((0, n_pad - N), (0, 0)))
    mask2d = jnp.pad(attention_mask.reshape(N, 1).astype(jnp.float32),
                     ((0, n_pad - N), (0, 0)))

    # Lane-dense label dimension: pad 17 -> 128.  Padded weight columns are
    # zero; padded bias lanes are -1e30 (kills their exp() in the lse).
    w_pad = jnp.zeros((H, LABEL_PAD), jnp.bfloat16)
    w_pad = w_pad.at[:, :L].set(weight.astype(jnp.bfloat16))
    b_pad = jnp.full((1, LABEL_PAD), _NEG_INF, jnp.float32)
    b_pad = b_pad.at[:, :L].set(bias.reshape(1, L).astype(jnp.float32))

    seed = jnp.asarray([dropout_seed], dtype=jnp.int32)

    kernel = functools.partial(_ner_head_kernel,
                               dropout_p=DROPOUT_P if train else 0.0)

    cost = pl.CostEstimate(
        flops=2 * n_pad * H * LABEL_PAD,
        transcendentals=n_pad * (LABEL_PAD + 1),
        bytes_accessed=(n_pad * H * 2 + H * LABEL_PAD * 2
                        + n_pad * LABEL_PAD * 4 + n_pad * 8),
    )

    logits_pad, parts = pl.pallas_call(
        kernel,
        grid=(num_tiles,),
        out_shape=(
            jax.ShapeDtypeStruct((n_pad, LABEL_PAD), jnp.float32),
            jax.ShapeDtypeStruct((num_tiles * 8, 128), jnp.float32),
        ),
        in_specs=[
            pl.BlockSpec((tn, H), lambda i: (i, 0)),             # x
            pl.BlockSpec((H, LABEL_PAD), lambda i: (0, 0)),      # W
            pl.BlockSpec((1, LABEL_PAD), lambda i: (0, 0)),      # b
            pl.BlockSpec((tn, 1), lambda i: (i, 0)),             # labels
            pl.BlockSpec((tn, 1), lambda i: (i, 0)),             # mask
            pl.BlockSpec(memory_space=pltpu.MemorySpace.SMEM),   # seed
        ],
        out_specs=(
            pl.BlockSpec((tn, LABEL_PAD), lambda i: (i, 0)),     # logits
            pl.BlockSpec((8, 128), lambda i: (i, 0)),            # partials
        ),
        compiler_params=pltpu.CompilerParams(
            dimension_semantics=("parallel",),
            vmem_limit_bytes=32 * 1024 * 1024,
        ),
        cost_estimate=cost,
    )(x2d, w_pad, b_pad, labels2d, mask2d, seed)

    outputs = {"logits": logits_pad[:N, :L].reshape(B, S, L)}
    if train:
        parts = parts.reshape(num_tiles, 8, 128)
        total = jnp.sum(parts[:, 0, 0])
        count = jnp.sum(parts[:, 0, 1])
        outputs["loss"] = total / jnp.maximum(count, 1.0)   # guard count==0
    return outputs


def ner_model_forward(params, x, train=True):
    """NERmodel.forward (use_crf=False path)."""
    # TODO(synk): the pretrained BERT encoder is replaced by a deterministic
    # embedding-lookup stand-in (plain-JAX glue); the full transformer stack
    # has no clean single-kernel Pallas equivalent here.
    seq_out = params["embedding"][x["input_ids"]]            # (B, S, H)
    return ner_head(seq_out, x["attention_mask"], x["token_label"],
                    params["label_w"], params["label_b"],
                    dropout_seed=params["dropout_seed"], train=train)


if __name__ == "__main__":
    # small, deterministic synthetic problem
    B, S, H, L, VOCAB = 2, 8, 32, NUM_LABELS, 64

    key = jax.random.PRNGKey(0)
    k_emb, k_w, k_b, k_ids, k_lab = jax.random.split(key, 5)

    params = {
        "embedding": jax.random.normal(k_emb, (VOCAB, H), dtype=jnp.float32),
        # torch Linear stores (out, in); we keep (in, out) = (H, L)
        "label_w": jax.random.normal(k_w, (H, L), dtype=jnp.float32) * 0.05,
        "label_b": jax.random.normal(k_b, (L,), dtype=jnp.float32) * 0.01,
        "dropout_seed": 5,   # cfg.seed
    }

    input_ids = jax.random.randint(k_ids, (B, S), 0, VOCAB, dtype=jnp.int32)
    attention_mask = jnp.array(
        [[1, 1, 1, 1, 1, 1, 0, 0],
         [1, 1, 1, 1, 1, 1, 1, 1]], dtype=jnp.int32)
    token_label = jax.random.randint(k_lab, (B, S), 0, L, dtype=jnp.int32)

    x = {
        "input_ids": input_ids,
        "attention_mask": attention_mask,
        "token_label": token_label,
    }

    outputs = ner_model_forward(params, x, train=True)
    jax.block_until_ready(outputs["logits"])
    jax.block_until_ready(outputs["loss"])

    assert outputs["logits"].shape == (B, S, L)
    assert bool(jnp.isfinite(outputs["loss"]))
    print("KERNEL_OK")
</pallas_src>

<mosaic_0001>
module attributes {stable_mosaic.version = 11 : i64} {
  func.func @_ner_head_kernel(%arg0: i32, %arg1: memref<16x32xbf16, #tpu.memory_space<vmem>>, %arg2: memref<32x128xbf16, #tpu.memory_space<vmem>>, %arg3: memref<1x128xf32, #tpu.memory_space<vmem>>, %arg4: memref<16x1xi32, #tpu.memory_space<vmem>>, %arg5: memref<16x1xf32, #tpu.memory_space<vmem>>, %arg6: memref<1xi32, #tpu.memory_space<smem>>, %arg7: memref<16x128xf32, #tpu.memory_space<vmem>>, %arg8: memref<8x128xf32, #tpu.memory_space<vmem>>) attributes {dimension_semantics = [#tpu.dimension_semantics<parallel>], iteration_bounds = array<i64: 1>, scalar_prefetch = 0 : i64, scratch_operands = 0 : i64, tpu.core_type = #tpu.core_type<tc>, window_params = [{transform_indices = @transform_0, window_bounds = array<i64: 16, 32>}, {pipeline_mode = #tpu.pipeline_mode<synchronous>, transform_indices = @transform_1, window_bounds = array<i64: 32, 128>}, {pipeline_mode = #tpu.pipeline_mode<synchronous>, transform_indices = @transform_2, window_bounds = array<i64: 1, 128>}, {transform_indices = @transform_3, window_bounds = array<i64: 16, 1>}, {transform_indices = @transform_4, window_bounds = array<i64: 16, 1>}, {transform_indices = @transform_5, window_bounds = array<i64: 1>}, {transform_indices = @transform_6, window_bounds = array<i64: 16, 128>}, {transform_indices = @transform_7, window_bounds = array<i64: 8, 128>}]} {
    %c0 = arith.constant 0 : index
    %c0_0 = arith.constant 0 : index
    %0 = vector.load %arg1[%c0, %c0_0] : memref<16x32xbf16, #tpu.memory_space<vmem>>, vector<16x32xbf16>
    %1 = tpu.iota {dimensions = array<i32: 0>} : vector<16x32xi32>
    %2 = tpu.iota {dimensions = array<i32: 1>} : vector<16x32xi32>
    %c16_i32 = arith.constant 16 : i32
    %3 = arith.muli %arg0, %c16_i32 : i32
    %4 = vector.broadcast %3 : i32 to vector<16x32xi32>
    %5 = arith.addi %4, %1 : vector<16x32xi32>
    %c32_i32 = arith.constant 32 : i32
    %6 = vector.broadcast %c32_i32 : i32 to vector<16x32xi32>
    %7 = arith.muli %5, %6 : vector<16x32xi32>
    %8 = arith.addi %7, %2 : vector<16x32xi32>
    %c0_1 = arith.constant 0 : index
    %9 = memref.load %arg6[%c0_1] : memref<1xi32, #tpu.memory_space<smem>>
    %c-1640531527_i32 = arith.constant -1640531527 : i32
    %10 = arith.muli %9, %c-1640531527_i32 : i32
    %11 = vector.broadcast %10 : i32 to vector<16x32xi32>
    %12 = arith.addi %8, %11 : vector<16x32xi32>
    %c16_i32_2 = arith.constant 16 : i32
    %13 = vector.broadcast %c16_i32_2 : i32 to vector<16x32xi32>
    %14 = arith.shrsi %12, %13 : vector<16x32xi32>
    %c65535_i32 = arith.constant 65535 : i32
    %15 = vector.broadcast %c65535_i32 : i32 to vector<16x32xi32>
    %16 = arith.andi %14, %15 : vector<16x32xi32>
    %17 = arith.xori %12, %16 : vector<16x32xi32>
    %c-2048144789_i32 = arith.constant -2048144789 : i32
    %18 = vector.broadcast %c-2048144789_i32 : i32 to vector<16x32xi32>
    %19 = arith.muli %17, %18 : vector<16x32xi32>
    %c13_i32 = arith.constant 13 : i32
    %20 = vector.broadcast %c13_i32 : i32 to vector<16x32xi32>
    %21 = arith.shrsi %19, %20 : vector<16x32xi32>
    %c524287_i32 = arith.constant 524287 : i32
    %22 = vector.broadcast %c524287_i32 : i32 to vector<16x32xi32>
    %23 = arith.andi %21, %22 : vector<16x32xi32>
    %24 = arith.xori %19, %23 : vector<16x32xi32>
    %c-1028477387_i32 = arith.constant -1028477387 : i32
    %25 = vector.broadcast %c-1028477387_i32 : i32 to vector<16x32xi32>
    %26 = arith.muli %24, %25 : vector<16x32xi32>
    %c16_i32_3 = arith.constant 16 : i32
    %27 = vector.broadcast %c16_i32_3 : i32 to vector<16x32xi32>
    %28 = arith.shrsi %26, %27 : vector<16x32xi32>
    %c65535_i32_4 = arith.constant 65535 : i32
    %29 = vector.broadcast %c65535_i32_4 : i32 to vector<16x32xi32>
    %30 = arith.andi %28, %29 : vector<16x32xi32>
    %31 = arith.xori %26, %30 : vector<16x32xi32>
    %c8388607_i32 = arith.constant 8388607 : i32
    %32 = vector.broadcast %c8388607_i32 : i32 to vector<16x32xi32>
    %33 = arith.andi %31, %32 : vector<16x32xi32>
    %c6710886_i32 = arith.constant 6710886 : i32
    %34 = vector.broadcast %c6710886_i32 : i32 to vector<16x32xi32>
    %35 = arith.cmpi slt, %33, %34 : vector<16x32xi32>
    %cst = arith.constant 0.000000e+00 : bf16
    %36 = vector.broadcast %cst : bf16 to vector<16x32xbf16>
    %37 = arith.select %35, %0, %36 : vector<16x32xi1>, vector<16x32xbf16>
    %c0_5 = arith.constant 0 : index
    %c0_6 = arith.constant 0 : index
    %38 = vector.load %arg2[%c0_5, %c0_6] : memref<32x128xbf16, #tpu.memory_space<vmem>>, vector<32x128xbf16>
    %cst_7 = arith.constant dense<0.000000e+00> : vector<16x128xf32>
    %39 = tpu.matmul %37, %38, %cst_7 {dimension_numbers = #tpu.dot_dimension_numbers<[1], [0], [0], [1], [0, 0, 1, 1], [], []>} : vector<16x32xbf16>, vector<32x128xbf16>, vector<16x128xf32> -> vector<16x128xf32>
    %cst_8 = arith.constant 1.250000e+00 : f32
    %40 = vector.broadcast %cst_8 : f32 to vector<16x128xf32>
    %41 = arith.mulf %39, %40 : vector<16x128xf32>
    %c0_9 = arith.constant 0 : index
    %c0_10 = arith.constant 0 : index
    %42 = vector.load %arg3[%c0_9, %c0_10] : memref<1x128xf32, #tpu.memory_space<vmem>>, vector<1x128xf32>
    %43 = vector.broadcast %42 : vector<1x128xf32> to vector<16x128xf32>
    %44 = arith.addf %41, %43 : vector<16x128xf32>
    %c0_11 = arith.constant 0 : index
    %c0_12 = arith.constant 0 : index
    %45 = vector.load %arg7[%c0_11, %c0_12] : memref<16x128xf32, #tpu.memory_space<vmem>>, vector<16x128xf32>
    tpu.vector_store %arg7[%c0_11, %c0_12], %44 {strides = array<i32>} : memref<16x128xf32, #tpu.memory_space<vmem>>, vector<16x128xf32>,
    %cst_13 = arith.constant dense<0xFF800000> : vector<16xf32>
    %46 = vector.multi_reduction <maximumf>, %44, %cst_13 [1] : vector<16x128xf32> to vector<16xf32>
    %47 = vector.shape_cast %46 : vector<16xf32> to vector<16x1xf32>
    %48 = vector.broadcast %47 : vector<16x1xf32> to vector<16x128xf32>
    %49 = arith.subf %44, %48 : vector<16x128xf32>
    %50 = math.exp %49 : vector<16x128xf32>
    %cst_14 = arith.constant dense<0.000000e+00> : vector<16xf32>
    %51 = vector.multi_reduction <add>, %50, %cst_14 [1] : vector<16x128xf32> to vector<16xf32>
    %52 = vector.shape_cast %51 : vector<16xf32> to vector<16x1xf32>
    %53 = math.log %52 : vector<16x1xf32>
    %54 = arith.addf %53, %47 : vector<16x1xf32>
    %c0_15 = arith.constant 0 : index
    %c0_16 = arith.constant 0 : index
    %55 = vector.load %arg4[%c0_15, %c0_16] : memref<16x1xi32, #tpu.memory_space<vmem>>, vector<16x1xi32>
    %56 = tpu.iota {dimensions = array<i32: 1>} : vector<16x128xi32>
    %57 = vector.broadcast %55 : vector<16x1xi32> to vector<16x128xi32>
    %58 = arith.cmpi eq, %56, %57 : vector<16x128xi32>
    %cst_17 = arith.constant 0.000000e+00 : f32
    %59 = vector.broadcast %cst_17 : f32 to vector<16x128xf32>
    %60 = arith.select %58, %44, %59 : vector<16x128xi1>, vector<16x128xf32>
    %cst_18 = arith.constant dense<0.000000e+00> : vector<16xf32>
    %61 = vector.multi_reduction <add>, %60, %cst_18 [1] : vector<16x128xf32> to vector<16xf32>
    %62 = vector.shape_cast %61 : vector<16xf32> to vector<16x1xf32>
    %63 = arith.subf %54, %62 : vector<16x1xf32>
    %c0_19 = arith.constant 0 : index
    %c0_20 = arith.constant 0 : index
    %64 = vector.load %arg5[%c0_19, %c0_20] : memref<16x1xf32, #tpu.memory_space<vmem>>, vector<16x1xf32>
    %65 = arith.mulf %63, %64 : vector<16x1xf32>
    %66 = vector.shape_cast %65 : vector<16x1xf32> to vector<1x16x1xf32>
    %cst_21 = arith.constant dense<0.000000e+00> : vector<1xf32>
    %67 = vector.multi_reduction <add>, %66, %cst_21 [1, 2] : vector<1x16x1xf32> to vector<1xf32>
    %68 = vector.shape_cast %67 : vector<1xf32> to vector<1x1x1xf32>
    %69 = vector.extract %68[0, 0, 0] : f32 from vector<1x1x1xf32>
    %70 = vector.shape_cast %64 : vector<16x1xf32> to vector<1x16x1xf32>
    %cst_22 = arith.constant dense<0.000000e+00> : vector<1xf32>
    %71 = vector.multi_reduction <add>, %70, %cst_22 [1, 2] : vector<1x16x1xf32> to vector<1xf32>
    %72 = vector.shape_cast %71 : vector<1xf32> to vector<1x1x1xf32>
    %73 = vector.extract %72[0, 0, 0] : f32 from vector<1x1x1xf32>
    %74 = tpu.iota {dimensions = array<i32: 0>} : vector<8x128xi32>
    %75 = tpu.iota {dimensions = array<i32: 1>} : vector<8x128xi32>
    %c0_i32 = arith.constant 0 : i32
    %76 = vector.broadcast %c0_i32 : i32 to vector<8x128xi32>
    %77 = arith.cmpi eq, %74, %76 : vector<8x128xi32>
    %c0_i32_23 = arith.constant 0 : i32
    %78 = vector.broadcast %c0_i32_23 : i32 to vector<8x128xi32>
    %79 = arith.cmpi eq, %75, %78 : vector<8x128xi32>
    %80 = arith.andi %77, %79 : vector<8x128xi1>
    %cst_24 = arith.constant 0.000000e+00 : f32
    %81 = vector.broadcast %69 : f32 to vector<8x128xf32>
    %82 = vector.broadcast %cst_24 : f32 to vector<8x128xf32>
    %83 = arith.select %80, %81, %82 : vector<8x128xi1>, vector<8x128xf32>
    %c0_i32_25 = arith.constant 0 : i32
    %84 = vector.broadcast %c0_i32_25 : i32 to vector<8x128xi32>
    %85 = arith.cmpi eq, %74, %84 : vector<8x128xi32>
    %c1_i32 = arith.constant 1 : i32
    %86 = vector.broadcast %c1_i32 : i32 to vector<8x128xi32>
    %87 = arith.cmpi eq, %75, %86 : vector<8x128xi32>
    %88 = arith.andi %85, %87 : vector<8x128xi1>
    %cst_26 = arith.constant 0.000000e+00 : f32
    %89 = vector.broadcast %73 : f32 to vector<8x128xf32>
    %90 = vector.broadcast %cst_26 : f32 to vector<8x128xf32>
    %91 = arith.select %88, %89, %90 : vector<8x128xi1>, vector<8x128xf32>
    %92 = arith.addf %83, %91 : vector<8x128xf32>
    %c0_27 = arith.constant 0 : index
    %c0_28 = arith.constant 0 : index
    %93 = vector.load %arg8[%c0_27, %c0_28] : memref<8x128xf32, #tpu.memory_space<vmem>>, vector<8x128xf32>
    tpu.vector_store %arg8[%c0_27, %c0_28], %92 {strides = array<i32>} : memref<8x128xf32, #tpu.memory_space<vmem>>, vector<8x128xf32>,
    return
  }
  func.func @transform_0(%arg0: i32) -> (i32, i32) {
    %c0_i32 = arith.constant 0 : i32
    %c0_i32_0 = arith.constant 0 : i32
    return %arg0, %c0_i32 : i32, i32
  }
  func.func @transform_1(%arg0: i32) -> (i32, i32) {
    %c0_i32 = arith.constant 0 : i32
    %c0_i32_0 = arith.constant 0 : i32
    %c0_i32_1 = arith.constant 0 : i32
    return %c0_i32, %c0_i32_0 : i32, i32
  }
  func.func @transform_2(%arg0: i32) -> (i32, i32) {
    %c0_i32 = arith.constant 0 : i32
    %c0_i32_0 = arith.constant 0 : i32
    %c0_i32_1 = arith.constant 0 : i32
    return %c0_i32, %c0_i32_0 : i32, i32
  }
  func.func @transform_3(%arg0: i32) -> (i32, i32) {
    %c0_i32 = arith.constant 0 : i32
    %c0_i32_0 = arith.constant 0 : i32
    return %arg0, %c0_i32 : i32, i32
  }
  func.func @transform_4(%arg0: i32) -> (i32, i32) {
    %c0_i32 = arith.constant 0 : i32
    %c0_i32_0 = arith.constant 0 : i32
    return %arg0, %c0_i32 : i32, i32
  }
  func.func @transform_5(%arg0: i32) -> i32 {
    %c0_i32 = arith.constant 0 : i32
    %c0_i32_0 = arith.constant 0 : i32
    return %c0_i32 : i32
  }
  func.func @transform_6(%arg0: i32) -> (i32, i32) {
    %c0_i32 = arith.constant 0 : i32
    %c0_i32_0 = arith.constant 0 : i32
    return %arg0, %c0_i32 : i32, i32
  }
  func.func @transform_7(%arg0: i32) -> (i32, i32) {
    %c0_i32 = arith.constant 0 : i32
    %c0_i32_0 = arith.constant 0 : i32
    return %arg0, %c0_i32 : i32, i32
  }
}

</mosaic_0001>

<bundles_post_ra>
// kernel: tpu_custom_call.1
= control target key start
LH: loop header
LB: loop body
LE: loop exit
PB: predicated region body
PF: predicated region fallthrough
CT: control target
= control target key end

     0   :  { %14 = vsyncpa [#allocation4], 0  ;;  %v31_v1 = vlaneseq  ;;  %s427_s0 = inlined_call_operand.vmem [shape: bf16[16,32], index: 0, kind: input, shape index: {}]   ;;  %s428_s1 = inlined_call_operand.vmem [shape: bf16[32,128], index: 1, kind: input, shape index: {}]   ;;  %s429_s2 = inlined_call_operand.vmem [shape: f32[1,128], index: 2, kind: input, shape index: {}]   ;;  %s430_s3 = inlined_call_operand.vmem [shape: s32[16,1], index: 3, kind: input, shape index: {}]   ;;  %s431_s4 = inlined_call_operand.vmem [shape: f32[16,1], index: 4, kind: input, shape index: {}]   ;;  %s432_s5 = inlined_call_operand.<no memory space> [shape: s32[1], index: 5, kind: input, shape index: {}]   ;;  %s433_s6 = inlined_call_operand.hbm [shape: f32[16,128], index: 6, kind: output, shape index: {0}]   ;;  %s434_s7 = inlined_call_operand.hbm [shape: f32[8,128], index: 7, kind: output, shape index: {1}]  }
   0x1   :  { %v256_v0 = vld [vmem:[%s428_s1 + $0x8] sm:$0xff]  ;;  %s45_s28 = smul.u32 2654435769, %s432_s5 }
   0x2   :  { %15 = vsyncpa [#allocation6], 0  ;;  %110 = vmatpush.bf16.msra.mxu0 %v256_v0  ;;  %v255_v2 = vld [vmem:[%s428_s1] sm:$0xff]  ;;  %v383_v3 = vshrl.u32 %v31_v1, 7  ;;  %v385_v4 = vand.u32 127, %v31_v1  ;;  %v329_v11 = vmov 0  }
   0x3   :  { %v46_v7 = vstv %s45_s28  ;;  %v148_v8 = vld [vmem:[%s430_s3] sm:$0xff]  ;;  %266 = vset.pattern.permute.xlu1 %v329_v11  ;;  %267 = vset.pattern.permute.xlu0 %v329_v11  ;;  %v149_v18 = vld [vmem:[%s430_s3 + $0x8] sm:$0xff]  ;;  %vm100_vm4 = vcmask 261120   ;;  %vm170_vm7 = vcmask 7168   ;;  %s212_s20 = sshll.u32 %s433_s6, 4  ;;  %s331_s21 = smov 128   ;;  %s213_s20 = int_to_ptr.hbm [resolvable:$true] %s212_s20 }
   0x4   :  { %v33_v5 = vadd.s32 8, %v383_v3  ;;  %v40_v6 = vmul.u32 32, %v383_v3  ;;  %151 = vperm.xlu1 %266, %v148_v8   ;;  %v29_v33 = vld [vmem:[%s427_s0] sm:$0xf]  ;;  %v30_v35 = vld [vmem:[%s427_s0 + $0x4] sm:$0xf] }
   0x5   :  { %v268_v42 = vld [vmem:[%s429_s2] ss:$0 sm:$0xff]  ;;  %v167_v61 = vld [vmem:[%s431_s4 + $0x8] sm:$0xff]  ;;  %s332_s22 = smov 8   ;;  %vm195_vm8 = vcmp.eq.s32.totalorder %v383_v3, 0  ;;  %vm196_vm9 = vcmp.eq.s32.totalorder %v385_v4, 0 }
   0x6   :  { %111 = vmatpush.bf16.msra.mxu0 %v255_v2  ;;  %v41_v9 = vmul.u32 32, %v33_v5  ;;  %v42_v10 = vadd.s32 %v40_v6, %v385_v4  ;;  %v166_v60 = vld [vmem:[%s431_s4] sm:$0xff]  ;;  %v184_v63 = vsel %vm170_vm7, %v167_v61, 0.0  ;;  %s330_s4 = smov [#allocation3]   ;;  %vm200_vm10 = vcmp.eq.s32.totalorder %v385_v4, 1  ;;  %vm197_vm11 = vmand %vm195_vm8, %vm196_vm9  ;;  %s333_s23 = smov [#allocation5]  }
   0x7   :  { %v183_v62 = vsel %vm170_vm7, %v166_v60, 0.0  ;;  %s210_s17 = sshll.u32 %s330_s4, 4  ;;  %vm201_vm12 = vmand %vm195_vm8, %vm200_vm10  ;;  %s224_s24 = sshll.u32 %s333_s23, 4  ;;  %s211_s17 = int_to_ptr.vmem [resolvable:$true] %s210_s17  ;;  %s225_s24 = int_to_ptr.vmem [resolvable:$true] %s224_s24 }
   0x8   :  { %v43_v12 = vadd.s32 %v41_v9, %v385_v4  ;;  %v47_v13 = vadd.s32 %v46_v7, %v42_v10  ;;  %v185_v0 = vadd.f32 %v184_v63, %v183_v62  ;;  %s226_s28 = sshll.u32 %s434_s7, 4  ;;  %s227_s28 = int_to_ptr.hbm [resolvable:$true] %s226_s28 }
   0xa   :  { %v48_v14 = vadd.s32 %v46_v7, %v43_v12  ;;  %v240_v15 = vshrl.u32 %v47_v13, 16 }
   0xc   :  { %v241_v16 = vshrl.u32 %v48_v14, 16  ;;  %v53_v17 = vxor.u32 %v240_v15, %v47_v13  ;;  %154 = vperm.xlu1 %266, %v149_v18  }
   0xe   :  { %v54_v19 = vxor.u32 %v241_v16, %v48_v14  ;;  %v55_v20 = vmul.u32 2246822507, %v53_v17 }
  0x10   :  { %v56_v21 = vmul.u32 2246822507, %v54_v19  ;;  %v242_v22 = vshrl.u32 %v55_v20, 13 }
  0x12   :  { %v243_v23 = vshrl.u32 %v56_v21, 13  ;;  %v61_v24 = vxor.u32 %v242_v22, %v55_v20 }
  0x14   :  { %v62_v25 = vxor.u32 %v243_v23, %v56_v21  ;;  %v63_v26 = vmul.u32 3266489909, %v61_v24 }
  0x16   :  { %v64_v27 = vmul.u32 3266489909, %v62_v25  ;;  %v244_v28 = vshrl.u32 %v63_v26, 16 }
  0x18   :  { %v245_v29 = vshrl.u32 %v64_v27, 16  ;;  %v69_v30 = vxor.u32 %v244_v28, %v63_v26 }
  0x1a   :  { %v70_v31 = vxor.u32 %v245_v29, %v64_v27  ;;  %v71_v32 = vand.u32 8388607, %v69_v30 }
  0x1c   :  { %v72_v34 = vand.u32 8388607, %v70_v31  ;;  %vm73_vm0 = vcmp.lt.s32.totalorder %v71_v32, 6710886 }
  0x1d   :  { %vm75_vm1 = vmpackc.low %vm73_vm0, %vm73_vm0 }
  0x1e   :  { %vm74_vm2 = vcmp.lt.s32.totalorder %v72_v34, 6710886  ;;  %v77_v36 = vsel %vm75_vm1, %v29_v33, 0 }
  0x1f   :  { %vm76_vm3 = vmpackc.low %vm74_vm2, %vm74_vm2  ;;  %v85_v37 = vunpack.c.l.b16 %v77_v36 }
  0x20   :  { %v78_v38 = vsel %vm76_vm3, %v30_v35, 0 }
  0x21   :  { %v86_v39 = vunpack.c.l.b16 %v78_v38 }
  0x23   :  { %v87_v40 = vpack.c.b16 %v86_v39, %v85_v37 }
  0x25   :  { %254 = vmatmul.msk.bf16.vlgmr.msra.gmra.mxu0 %vm100_vm4, %v87_v40 }
  0x76   :  { %v152_v41 = vpop.permute.xlu1 %151 }
  0x77   :  { %vm156_vm6 = vcmp.eq.s32.totalorder %v385_v4, %v152_v41 }
  0x7e   :  { %v155_v46 = vpop.permute.xlu1 %154 }
  0x7f   :  { %vm157_vm5 = vcmp.eq.s32.totalorder %v385_v4, %v155_v46 }
  0xa2   :  { %v113_v43 = vpop.f32.mrf.mxu0 }
  0xa3   :  { %v118_v44 = vmul.f32 1.25, %v113_v43 }
  0xa5   :  { %v124_v45 = vadd.f32 %v268_v42, %v118_v44 }
  0xa7   :  { %126 = vst [vmem:[#allocation3] sm:$0xff] %v124_v45  ;;  %128 = vmax.xlane.f32.xlu0 %v124_v45  ;;  %v158_v51 = vsel %vm156_vm6, %v124_v45, 0.0 }
  0xaa   :  { %v115_v47 = vpop.f32.mrf.mxu0 }
  0xab   :  { %v119_v48 = vmul.f32 1.25, %v115_v47 }
  0xad   :  { %v125_v49 = vadd.f32 %v268_v42, %v119_v48 }
  0xaf   :  { %127 = vst [vmem:[#allocation3 + $0x8] sm:$0xff] %v125_v49  ;;  %130 = vmax.xlane.f32.xlu0 %v125_v49  ;;  %v159_v50 = vsel %vm157_vm5, %v125_v49, 0.0 }
  0xb0   :  { %162 = vadd.xlane.f32.xlu1 %v159_v50  ;;  %218 = dma.vmem_to_hbm [thread:$0]  %s211_s17, 256, %s213_s20, [#allocation4], %s331_s21, %s331_s21, %s332_s22  }
  0xb7   :  { %160 = vadd.xlane.f32.xlu0 %v158_v51 }
  0xbf   :  { %186 = vadd.xlane.f32.xlu0 %v185_v0 }
 0x11a   :  { %v129_v52 = vpop.xlane.xlu0 %128 }
 0x11b   :  { %v132_v53 = vsub.f32 %v124_v45, %v129_v52 }
 0x11d   :  { %v134_v54 = vmul.f32 1.442695, %v132_v53 }
 0x11f   :  { %269 = vpow2.f32 %v134_v54 }
 0x122   :  { %v131_v55 = vpop.xlane.xlu0 %130 }
 0x123   :  { %v133_v56 = vsub.f32 %v125_v49, %v131_v55  ;;  %v163_v13 = vpop.xlane.xlu1 %162 }
 0x125   :  { %v270_v57 = vpop.eup %269  ;;  %v136_v58 = vmul.f32 1.442695, %v133_v56 }
 0x126   :  { %138 = vadd.xlane.f32.xlu2 %v270_v57 }
 0x127   :  { %271 = vpow2.f32 %v136_v58 }
 0x12a   :  { %v161_v9 = vpop.xlane.xlu0 %160 }
 0x12d   :  { %v272_v59 = vpop.eup %271 }
 0x12e   :  { %140 = vadd.xlane.f32.xlu2 %v272_v59 }
 0x132   :  { %v187_v20 = vpop.xlane.xlu0 %186 }
 0x133   :  { %v188_v21 = vrot.slane %v187_v20, 4 }
 0x135   :  { %v189_v22 = vadd.f32 %v188_v21, %v187_v20 }
 0x137   :  { %v190_v23 = vrot.slane %v189_v22, 2 }
 0x139   :  { %v191_v27 = vadd.f32 %v190_v23, %v189_v22 }
 0x13b   :  { %v192_v30 = vrot.slane %v191_v27, 1 }
 0x13d   :  { %v193_v33 = vadd.f32 %v192_v30, %v191_v27 }
 0x199   :  { %v139_v1 = vpop.xlane.xlu2 %138 }
 0x19a   :  { %273 = vlog2.f32 %v139_v1 }
 0x1a0   :  { %v274_v2 = vpop.eup %273 }
 0x1a1   :  { %v143_v5 = vmul.f32 0.6931472, %v274_v2  ;;  %v141_v6 = vpop.xlane.xlu2 %140 }
 0x1a2   :  { %275 = vlog2.f32 %v141_v6 }
 0x1a3   :  { %v146_v7 = vadd.f32 %v143_v5, %v129_v52 }
 0x1a5   :  { %v164_v10 = vsub.f32 %v146_v7, %v161_v9 }
 0x1a7   :  { %v168_v15 = vmul.f32 %v166_v60, %v164_v10 }
 0x1a8   :  { %v276_v8 = vpop.eup %275 }
 0x1a9   :  { %v145_v11 = vmul.f32 0.6931472, %v276_v8  ;;  %v171_v17 = vsel %vm170_vm7, %v168_v15, 0.0 }
 0x1ab   :  { %v147_v12 = vadd.f32 %v145_v11, %v131_v55 }
 0x1ad   :  { %v165_v14 = vsub.f32 %v147_v12, %v163_v13 }
 0x1af   :  { %v169_v16 = vmul.f32 %v167_v61, %v165_v14 }
 0x1b1   :  { %v172_v18 = vsel %vm170_vm7, %v169_v16, 0.0 }
 0x1b2   :  { %v173_v19 = vadd.f32 %v172_v18, %v171_v17 }
 0x1b4   :  { %174 = vadd.xlane.f32.xlu2 %v173_v19 }
 0x227   :  { %v175_v24 = vpop.xlane.xlu2 %174 }
 0x228   :  { %v176_v25 = vrot.slane %v175_v24, 4 }
 0x22a   :  { %v177_v26 = vadd.f32 %v176_v25, %v175_v24 }
 0x22c   :  { %v178_v28 = vrot.slane %v177_v26, 2 }
 0x22e   :  { %v179_v29 = vadd.f32 %v178_v28, %v177_v26 }
 0x230   :  { %v180_v31 = vrot.slane %v179_v29, 1 }
 0x232   :  { %v181_v32 = vadd.f32 %v180_v31, %v179_v29 }
 0x234   :  { %257 = vpush %v181_v32 }
 0x235   :  { %259 = vpush %v193_v33 }
 0x265   :  { %s258_s6 = spop %257 }
 0x266   :  { %v198_v34 = vstv %s258_s6  ;;  %s260_s25 = spop %259 }
 0x267   :  { %v199_v35 = vsel %vm197_vm11, %v198_v34, 0.0  ;;  %v202_v36 = vstv %s260_s25 }
 0x268   :  { %v203_v37 = vsel %vm201_vm12, %v202_v36, 0.0 }
 0x269   :  { %v204_v38 = vadd.f32 %v203_v37, %v199_v35 }
 0x26b   :  { %205 = vst [vmem:[#allocation5] sm:$0xff] %v204_v38 }
 0x26c   :  { %229 = dma.vmem_to_hbm [thread:$0]  %s225_s24, 128, %s227_s28, [#allocation6]  }
 0x26d   :  { %325 = dma.done.wait [#allocation4], 256  }
 0x26e   :  { %326 = vsyncadd [#allocation4], 4294967040 }
 0x26f   :  { %327 = dma.done.wait [#allocation6], 128  }
 0x270   :  { %328 = vsyncadd [#allocation6], 4294967168 }
 0x271   :  { %238 = vsyncpa [#allocation4], 1 }
 0x272   :  { %239 = vsyncpa [#allocation6], 1 }

</bundles_post_ra>
